<compile_context>
chip_gen: v7x
topology: tpu7x:2x2x1
jax: 0.10.0
libtpu: 0.0.40
codegen_flags: <defaults>
</compile_context>

<pallas_src>
import functools
import math

import jax
import jax.numpy as jnp
from jax.experimental import pallas as pl
from jax.experimental.pallas import tpu as pltpu

_VMEM_LIMIT = 48 * 1024 * 1024  # safe on v5e/v6e (128 MiB) and v7x (64 MiB)


def _pick_tile(dim, target):
    """Largest divisor of `dim` <= target, preferring multiples of 128 (lane /
    MXU friendly), then multiples of 8 (sublane); falls back to the full dim
    (full-extent blocks are always legal)."""
    if dim <= target:
        return dim
    for align in (128, 8):
        t = (target // align) * align
        while t >= align:
            if dim % t == 0:
                return t
            t -= align
    return dim


# ----------------------------------------------------------------------------
# Tiled linear kernel:  y = x @ W^T + b   (PyTorch Linear convention,
# W: (Dout, Din)); the transpose is expressed as a Din-Din contraction so no
# XLU transpose is emitted.  MXU operands cast to bf16, f32 accumulation.
# ----------------------------------------------------------------------------
def _linear_kernel(x_ref, w_ref, b_ref, o_ref, acc_ref):
    kk = pl.program_id(2)

    @pl.when(kk == 0)
    def _init():
        acc_ref[...] = jnp.zeros(acc_ref.shape, acc_ref.dtype)

    acc_ref[...] += jax.lax.dot_general(
        x_ref[...].astype(jnp.bfloat16),          # (tm, tk)
        w_ref[...].astype(jnp.bfloat16),          # (tn, tk)
        dimension_numbers=(((1,), (1,)), ((), ())),
        preferred_element_type=jnp.float32)        # -> (tm, tn) f32

    @pl.when(kk == pl.num_programs(2) - 1)
    def _finalize():
        o_ref[...] = (acc_ref[...] + b_ref[...]).astype(o_ref.dtype)


def linear(x2d, w, b, *, tm_target=512, tn_target=512, tk_target=512):
    """x2d: (N, Din); w: (Dout, Din); b: (Dout,) -> (N, Dout)."""
    N, Din = x2d.shape
    Dout = w.shape[0]
    tm = _pick_tile(N, tm_target)
    tn = _pick_tile(Dout, tn_target)
    tk = _pick_tile(Din, tk_target)
    grid = (N // tm, Dout // tn, Din // tk)

    flops = 2 * N * Dout * Din
    bytes_accessed = 4 * (N * Din * (Dout // tn)        # x re-read per tn strip
                          + Dout * Din * (N // tm)       # w re-read per tm strip
                          + N * Dout + Dout)

    return pl.pallas_call(
        _linear_kernel,
        out_shape=jax.ShapeDtypeStruct((N, Dout), x2d.dtype),
        grid_spec=pltpu.PrefetchScalarGridSpec(
            num_scalar_prefetch=0,
            grid=grid,
            in_specs=[
                pl.BlockSpec((tm, tk), lambda i, j, k: (i, k)),
                pl.BlockSpec((tn, tk), lambda i, j, k: (j, k)),
                pl.BlockSpec((1, tn), lambda i, j, k: (0, j)),
            ],
            out_specs=pl.BlockSpec((tm, tn), lambda i, j, k: (i, j)),
            scratch_shapes=[pltpu.VMEM((tm, tn), jnp.float32)],
        ),
        compiler_params=pltpu.CompilerParams(
            dimension_semantics=("parallel", "parallel", "arbitrary"),
            vmem_limit_bytes=_VMEM_LIMIT,
        ),
        cost_estimate=pl.CostEstimate(
            flops=flops, transcendentals=0, bytes_accessed=bytes_accessed),
    )(x2d, w, b.reshape(1, Dout))


# ----------------------------------------------------------------------------
# Flash-style attention kernel, heads batched inside the kernel.
#   rot_*: compact (tile, hd) rotation blocks (cos - sin | 1), NOT broadcast
#   over heads; q rotation + score scale applied once per q tile (ik == 0).
# ----------------------------------------------------------------------------
def _flash_attention_kernel(rotq_ref, rotk_ref, q_ref, k_ref, v_ref, o_ref,
                            q_sc, m_sc, l_sc, acc_sc, *, scale):
    ik = pl.program_id(2)

    @pl.when(ik == 0)
    def _init():
        # Rotate + pre-scale q once per (iq, b) tile; store bf16 for the MXU.
        rq = rotq_ref[...] * scale                              # (tq, hd)
        q_sc[...] = (q_ref[0, 0] * rq[None, :, :]).astype(q_sc.dtype)  # (H,tq,hd)
        m_sc[...] = jnp.full(m_sc.shape, -jnp.inf, dtype=m_sc.dtype)
        l_sc[...] = jnp.zeros(l_sc.shape, l_sc.dtype)
        acc_sc[...] = jnp.zeros(acc_sc.shape, acc_sc.dtype)

    # Rotate k (cheap VPU multiply, broadcast over heads), cast to bf16.
    k = (k_ref[0, 0] * rotk_ref[...][None, :, :]).astype(jnp.bfloat16)  # (H,tk,hd)
    v = v_ref[0, 0].astype(jnp.bfloat16)                                # (H,tk,hd)
    q = q_sc[...]                                                       # (H,tq,hd)

    # Batched-over-heads QK^T on the MXU (bf16 in, f32 accumulation).
    s = jnp.einsum('hqd,hkd->hqk', q, k,
                   preferred_element_type=jnp.float32)                  # (H,tq,tk)

    m_prev = m_sc[...]                                                  # (H,tq,1)
    m_new = jnp.maximum(m_prev, jnp.max(s, axis=-1, keepdims=True))
    alpha = jnp.exp(m_prev - m_new)
    p = jnp.exp(s - m_new)                                              # (H,tq,tk)

    l_sc[...] = alpha * l_sc[...] + jnp.sum(p, axis=-1, keepdims=True)
    acc_sc[...] = alpha * acc_sc[...] + jnp.einsum(
        'hqk,hkd->hqd', p.astype(jnp.bfloat16), v,
        preferred_element_type=jnp.float32)                             # (H,tq,hd)
    m_sc[...] = m_new

    @pl.when(ik == pl.num_programs(2) - 1)
    def _finalize():
        out = acc_sc[...] / l_sc[...]        # exact division, once per tile
        num_heads = out.shape[0]
        # Single lane-dense (tq, D) store: head h at columns [h*hd, (h+1)*hd).
        o_ref[0] = jnp.concatenate(
            [out[h] for h in range(num_heads)], axis=-1).astype(o_ref.dtype)


def flash_attention(qkv, rot, *, scale, tq_target=256, tk_target=256):
    """qkv: (3, B, H, L, hd) head-leading; rot: (L, hd) -> out (B, L, D)."""
    _, B, H, L, hd = qkv.shape
    D = H * hd

    # Cap the per-step (tile, D) f32 slab (~2 MiB) so double-buffered q/k/v/out
    # plus (H, tq, *) scratch stay well inside v7x's 64 MiB VMEM.
    row_cap = max(128, ((2 << 20) // (D * 4)) // 128 * 128)
    tq = _pick_tile(L, min(tq_target, row_cap))
    tk = _pick_tile(L, min(tk_target, row_cap))
    grid = (L // tq, B, L // tk)   # largest parallel axis outermost (megacore)

    kern = functools.partial(_flash_attention_kernel, scale=scale)
    flops = 4 * B * H * L * L * hd
    bytes_accessed = 4 * (B * L * D                       # q
                          + 2 * B * L * D * (L // tq)      # k, v re-streamed
                          + B * L * D                      # out
                          + 2 * L * hd)                    # rot tables

    return pl.pallas_call(
        kern,
        out_shape=jax.ShapeDtypeStruct((B, L, D), qkv.dtype),
        grid_spec=pltpu.PrefetchScalarGridSpec(
            num_scalar_prefetch=0,
            grid=grid,
            in_specs=[
                pl.BlockSpec((tq, hd), lambda iq, b, ik: (iq, 0)),
                pl.BlockSpec((tk, hd), lambda iq, b, ik: (ik, 0)),
                pl.BlockSpec((1, 1, H, tq, hd), lambda iq, b, ik: (0, b, 0, iq, 0)),
                pl.BlockSpec((1, 1, H, tk, hd), lambda iq, b, ik: (1, b, 0, ik, 0)),
                pl.BlockSpec((1, 1, H, tk, hd), lambda iq, b, ik: (2, b, 0, ik, 0)),
            ],
            out_specs=pl.BlockSpec((1, tq, D), lambda iq, b, ik: (b, iq, 0)),
            scratch_shapes=[
                pltpu.VMEM((H, tq, hd), jnp.bfloat16),   # rotated+scaled q (MXU)
                pltpu.VMEM((H, tq, 1), jnp.float32),     # running max
                pltpu.VMEM((H, tq, 1), jnp.float32),     # running sum
                pltpu.VMEM((H, tq, hd), jnp.float32),    # running weighted sum
            ],
        ),
        compiler_params=pltpu.CompilerParams(
            dimension_semantics=("parallel", "parallel", "arbitrary"),
            vmem_limit_bytes=_VMEM_LIMIT,
        ),
        cost_estimate=pl.CostEstimate(
            flops=flops, transcendentals=B * H * L * L,
            bytes_accessed=bytes_accessed),
    )(rot, rot, qkv, qkv, qkv)


# ----------------------------------------------------------------------------
# Full forward
# ----------------------------------------------------------------------------
def multi_head_attention(x, sin, cos, params, num_heads):
    B, L, D = x.shape
    hd = D // num_heads
    half = hd // 2
    scale = 1.0 / math.sqrt(hd)

    # --- fused QKV projection: weights concatenated along Dout -> (3D, D) ---
    x2d = x.reshape(B * L, D)
    w_qkv = jnp.concatenate([params["wq"], params["wk"], params["wv"]], axis=0)
    b_qkv = jnp.concatenate([params["bq"], params["bk"], params["bv"]], axis=0)
    qkv = linear(x2d, w_qkv, b_qkv)                       # (B*L, 3D)

    # head-leading layout for the batched attention kernel (one XLA transpose)
    qkv = qkv.reshape(B, L, 3, num_heads, hd)
    qkv = jnp.transpose(qkv, (2, 0, 3, 1, 4))             # (3, B, H, L, hd)

    # compact rotation table (L, hd):  -q*sin + q*cos == q*(cos - sin); pass->1
    rot = jnp.concatenate(
        [cos - sin, jnp.ones((L, hd - half), dtype=x.dtype)], axis=-1)

    attn = flash_attention(qkv, rot, scale=scale)          # (B, L, D)

    # --- output projection ---
    y = linear(attn.reshape(B * L, D), params["wo"], params["bo"])
    return y.reshape(B, L, D)


# ----------------------------------------------------------------------------
# Pure-JAX reference (mirrors the PyTorch forward) for a correctness check.
# ----------------------------------------------------------------------------
def ref_mha(x, sin, cos, params, num_heads):
    B, L, D = x.shape
    hd = D // num_heads

    def lin(a, w, b):
        return a @ w.T + b

    q = lin(x, params["wq"], params["bq"]).reshape(B, L, num_heads, hd)
    k = lin(x, params["wk"], params["bk"]).reshape(B, L, num_heads, hd)
    v = lin(x, params["wv"], params["bv"]).reshape(B, L, num_heads, hd)
    q_rot, q_pass = q[..., :hd // 2], q[..., hd // 2:]
    k_rot, k_pass = k[..., :hd // 2], k[..., hd // 2:]
    q = jnp.concatenate([-q_rot * sin[:, None] + q_rot * cos[:, None], q_pass], -1)
    k = jnp.concatenate([-k_rot * sin[:, None] + k_rot * cos[:, None], k_pass], -1)
    q = q.transpose(0, 2, 1, 3)
    k = k.transpose(0, 2, 1, 3)
    v = v.transpose(0, 2, 1, 3)
    scores = (q @ k.transpose(0, 1, 3, 2)) / math.sqrt(hd)
    attn = jax.nn.softmax(scores, axis=-1)
    out = (attn @ v).transpose(0, 2, 1, 3).reshape(B, L, D)
    return lin(out, params["wo"], params["bo"])


if __name__ == "__main__":
    B, L, D, num_heads = 2, 8, 32, 4
    hd = D // num_heads
    half = hd // 2

    key = jax.random.PRNGKey(0)
    keys = jax.random.split(key, 9)

    params = {
        "wq": 0.02 * jax.random.normal(keys[0], (D, D), jnp.float32),
        "bq": 0.02 * jax.random.normal(keys[1], (D,), jnp.float32),
        "wk": 0.02 * jax.random.normal(keys[2], (D, D), jnp.float32),
        "bk": 0.02 * jax.random.normal(keys[3], (D,), jnp.float32),
        "wv": 0.02 * jax.random.normal(keys[4], (D, D), jnp.float32),
        "bv": 0.02 * jax.random.normal(keys[5], (D,), jnp.float32),
        "wo": 0.02 * jax.random.normal(keys[6], (D, D), jnp.float32),
        "bo": 0.02 * jax.random.normal(keys[7], (D,), jnp.float32),
    }

    x = jax.random.normal(keys[8], (B, L, D), jnp.float32)

    # RoPE-style sin/cos tables of shape (L, head_dim // 2)
    pos = jnp.arange(L, dtype=jnp.float32)[:, None]
    inv_freq = 1.0 / (10000.0 ** (jnp.arange(half, dtype=jnp.float32) / half))
    angles = pos * inv_freq
    sin = jnp.sin(angles)
    cos = jnp.cos(angles)

    out = multi_head_attention(x, sin, cos, params, num_heads)
    out = jax.block_until_ready(out)

    ref = ref_mha(x, sin, cos, params, num_heads)
    assert out.shape == (B, L, D)
    # Tolerance loosened because MXU operands are cast to bf16 (f32 accumulate);
    # the reference runs in full f32.
    assert jnp.allclose(out, ref, atol=5e-3, rtol=5e-2), \
        float(jnp.max(jnp.abs(out - ref)))

    print("KERNEL_OK")
</pallas_src>

<mosaic_0001>
module attributes {stable_mosaic.version = 11 : i64} {
  func.func @_linear_kernel(%arg0: i32, %arg1: i32, %arg2: i32, %arg3: memref<16x32xf32, #tpu.memory_space<vmem>>, %arg4: memref<96x32xf32, #tpu.memory_space<vmem>>, %arg5: memref<1x96xf32, #tpu.memory_space<vmem>>, %arg6: memref<16x96xf32, #tpu.memory_space<vmem>>, %arg7: memref<16x96xf32, #tpu.memory_space<vmem>>) attributes {dimension_semantics = [#tpu.dimension_semantics<parallel>, #tpu.dimension_semantics<parallel>, #tpu.dimension_semantics<arbitrary>], iteration_bounds = array<i64: 1, 1, 1>, scalar_prefetch = 0 : i64, scratch_operands = 1 : i64, tpu.core_type = #tpu.core_type<tc>, window_params = [{transform_indices = @transform_0, window_bounds = array<i64: 16, 32>}, {transform_indices = @transform_1, window_bounds = array<i64: 96, 32>}, {transform_indices = @transform_2, window_bounds = array<i64: 1, 96>}, {transform_indices = @transform_3, window_bounds = array<i64: 16, 96>}]} {
    %c0_i32 = arith.constant 0 : i32
    %0 = arith.cmpi eq, %arg2, %c0_i32 : i32
    %1 = arith.extui %0 : i1 to i32
    %c0_i32_0 = arith.constant 0 : i32
    %2 = arith.cmpi ne, %1, %c0_i32_0 : i32
    scf.if %2 {
      %cst_10 = arith.constant 0.000000e+00 : f32
      %14 = vector.broadcast %cst_10 : f32 to vector<16x96xf32>
      %c0_11 = arith.constant 0 : index
      %c0_12 = arith.constant 0 : index
      %15 = vector.load %arg7[%c0_11, %c0_12] : memref<16x96xf32, #tpu.memory_space<vmem>>, vector<16x96xf32>
      tpu.vector_store %arg7[%c0_11, %c0_12], %14 {strides = array<i32>} : memref<16x96xf32, #tpu.memory_space<vmem>>, vector<16x96xf32>,
    } else {
    }
    %c0 = arith.constant 0 : index
    %c0_1 = arith.constant 0 : index
    %3 = vector.load %arg7[%c0, %c0_1] : memref<16x96xf32, #tpu.memory_space<vmem>>, vector<16x96xf32>
    %c0_2 = arith.constant 0 : index
    %c0_3 = arith.constant 0 : index
    %4 = vector.load %arg3[%c0_2, %c0_3] : memref<16x32xf32, #tpu.memory_space<vmem>>, vector<16x32xf32>
    %5 = arith.truncf %4 : vector<16x32xf32> to vector<16x32xbf16>
    %c0_4 = arith.constant 0 : index
    %c0_5 = arith.constant 0 : index
    %6 = vector.load %arg4[%c0_4, %c0_5] : memref<96x32xf32, #tpu.memory_space<vmem>>, vector<96x32xf32>
    %7 = arith.truncf %6 : vector<96x32xf32> to vector<96x32xbf16>
    %cst = arith.constant dense<0.000000e+00> : vector<16x96xf32>
    %8 = tpu.matmul %5, %7, %cst {dimension_numbers = #tpu.dot_dimension_numbers<[1], [1], [0], [0], [0, 0, 1, 0], [], []>} : vector<16x32xbf16>, vector<96x32xbf16>, vector<16x96xf32> -> vector<16x96xf32>
    %9 = arith.addf %3, %8 : vector<16x96xf32>
    %c0_6 = arith.constant 0 : index
    %c0_7 = arith.constant 0 : index
    %10 = vector.load %arg7[%c0_6, %c0_7] : memref<16x96xf32, #tpu.memory_space<vmem>>, vector<16x96xf32>
    tpu.vector_store %arg7[%c0_6, %c0_7], %9 {strides = array<i32>} : memref<16x96xf32, #tpu.memory_space<vmem>>, vector<16x96xf32>,
    %c0_i32_8 = arith.constant 0 : i32
    %11 = arith.cmpi eq, %arg2, %c0_i32_8 : i32
    %12 = arith.extui %11 : i1 to i32
    %c0_i32_9 = arith.constant 0 : i32
    %13 = arith.cmpi ne, %12, %c0_i32_9 : i32
    scf.if %13 {
      %c0_10 = arith.constant 0 : index
      %c0_11 = arith.constant 0 : index
      %14 = vector.load %arg7[%c0_10, %c0_11] : memref<16x96xf32, #tpu.memory_space<vmem>>, vector<16x96xf32>
      %c0_12 = arith.constant 0 : index
      %c0_13 = arith.constant 0 : index
      %15 = vector.load %arg5[%c0_12, %c0_13] : memref<1x96xf32, #tpu.memory_space<vmem>>, vector<1x96xf32>
      %16 = vector.broadcast %15 : vector<1x96xf32> to vector<16x96xf32>
      %17 = arith.addf %14, %16 : vector<16x96xf32>
      %c0_14 = arith.constant 0 : index
      %c0_15 = arith.constant 0 : index
      %18 = vector.load %arg6[%c0_14, %c0_15] : memref<16x96xf32, #tpu.memory_space<vmem>>, vector<16x96xf32>
      tpu.vector_store %arg6[%c0_14, %c0_15], %17 {strides = array<i32>} : memref<16x96xf32, #tpu.memory_space<vmem>>, vector<16x96xf32>,
    } else {
    }
    return
  }
  func.func @transform_0(%arg0: i32, %arg1: i32, %arg2: i32) -> (i32, i32) {
    %c0_i32 = arith.constant 0 : i32
    return %arg0, %arg2 : i32, i32
  }
  func.func @transform_1(%arg0: i32, %arg1: i32, %arg2: i32) -> (i32, i32) {
    %c0_i32 = arith.constant 0 : i32
    return %arg1, %arg2 : i32, i32
  }
  func.func @transform_2(%arg0: i32, %arg1: i32, %arg2: i32) -> (i32, i32) {
    %c0_i32 = arith.constant 0 : i32
    %c0_i32_0 = arith.constant 0 : i32
    return %c0_i32, %arg1 : i32, i32
  }
  func.func @transform_3(%arg0: i32, %arg1: i32, %arg2: i32) -> (i32, i32) {
    %c0_i32 = arith.constant 0 : i32
    return %arg0, %arg1 : i32, i32
  }
}

</mosaic_0001>

<bundles_post_ra>
// kernel: tpu_custom_call.1
= control target key start
LH: loop header
LB: loop body
LE: loop exit
PB: predicated region body
PF: predicated region fallthrough
CT: control target
= control target key end

     0   :  { %vm46_vm0 = vcmask 261120   ;;  %v200_v2 = vmov 0.0   ;;  %vm201_vm1 = vmmov 0   ;;  %vm20_vm2 = vcmask 785408   ;;  %s295_s0 = inlined_call_operand.vmem [shape: f32[16,32], index: 0, kind: input, shape index: {}]   ;;  %s296_s1 = inlined_call_operand.vmem [shape: f32[96,32], index: 1, kind: input, shape index: {}]   ;;  %s297_s2 = inlined_call_operand.vmem [shape: f32[1,96], index: 2, kind: input, shape index: {}]   ;;  %s298_s3 = inlined_call_operand.hbm [shape: f32[16,96], index: 3, kind: output, shape index: {}]  }
   0x1   :  { %v28_v0 = vld [vmem:[%s296_s1] sm:$0xff]  ;;  %v29_v1 = vld [vmem:[%s296_s1 + $0x8] sm:$0xff]  ;;  %155 = vmatprep.subr.bf16.mxu0 %v200_v2  ;;  %167 = vmatprep.mubr.msk.bf16.mxu0 %vm201_vm1, %v200_v2  ;;  %v30_v4 = vld [vmem:[%s296_s1 + $0x10] sm:$0xff]  ;;  %21 = vst.msk [vmem:[#allocation2] sm:$0xff] %vm20_vm2, %v200_v2 }
   0x2   :  { %v40_v3 = vpack.c.bf16 %v29_v1, %v28_v0  ;;  %v31_v5 = vld [vmem:[%s296_s1 + $0x18] sm:$0xff]  ;;  %22 = vst.msk [vmem:[#allocation2 + $0x8] sm:$0xff] %vm20_vm2, %v200_v2 }
   0x4   :  { %v51_v6 = vsel %vm46_vm0, %v40_v3, 0 }
   0x5   :  { %156 = vmatpush3.bf16.xpose.msra.mxu0 %v51_v6 }
   0x6   :  { %8 = vsyncpa [#allocation4], 0  ;;  %157 = vmatprep.subr.bf16.mxu0 %v200_v2  ;;  %v41_v7 = vpack.c.bf16 %v31_v5, %v30_v4  ;;  %v32_v9 = vld [vmem:[%s296_s1 + $0x20] sm:$0xff]  ;;  %v33_v10 = vld [vmem:[%s296_s1 + $0x28] sm:$0xff] }
   0x7   :  { %v42_v11 = vpack.c.bf16 %v33_v10, %v32_v9  ;;  %v34_v13 = vld [vmem:[%s296_s1 + $0x30] sm:$0xff]  ;;  %v35_v14 = vld [vmem:[%s296_s1 + $0x38] sm:$0xff]  ;;  %v36_v17 = vld [vmem:[%s296_s1 + $0x40] sm:$0xff] }
   0x8   :  { %v54_v8 = vsel %vm46_vm0, %v41_v7, 0  ;;  %v43_v15 = vpack.c.bf16 %v35_v14, %v34_v13  ;;  %v37_v18 = vld [vmem:[%s296_s1 + $0x48] sm:$0xff]  ;;  %v38_v21 = vld [vmem:[%s296_s1 + $0x50] sm:$0xff]  ;;  %v39_v22 = vld [vmem:[%s296_s1 + $0x58] sm:$0xff] }
   0x9   :  { %v57_v12 = vsel %vm46_vm0, %v42_v11, 0  ;;  %v44_v19 = vpack.c.bf16 %v37_v18, %v36_v17  ;;  %v45_v23 = vpack.c.bf16 %v39_v22, %v38_v21  ;;  %v25_v25 = vld [vmem:[%s295_s0] sm:$0xff]  ;;  %v26_v26 = vld [vmem:[%s295_s0 + $0x8] sm:$0xff]  ;;  %s202_s0 = smov [#allocation3]  }
   0xa   :  { %v60_v16 = vsel %vm46_vm0, %v43_v15, 0  ;;  %v27_v27 = vpack.c.bf16 %v26_v26, %v25_v25  ;;  %v23_v28 = vld [vmem:[#allocation2] sm:$0xff]  ;;  %v24_v30 = vld [vmem:[#allocation2 + $0x8] sm:$0xff]  ;;  %s135_s14 = sshll.u32 %s202_s0, 4  ;;  %s136_s14 = int_to_ptr.vmem [resolvable:$true] %s135_s14 }
   0xb   :  { %v63_v20 = vsel %vm46_vm0, %v44_v19, 0  ;;  %v66_v24 = vsel %vm46_vm0, %v45_v23, 0  ;;  %v147_v36 = vld [vmem:[%s297_s2] ss:$0 sm:$0xff]  ;;  %s176_s15 = scalar_lea.vmem %s136_s14, 256  ;;  %p181_p1 = scmp.lt.s32.totalorder %s136_s14, %s136_s14 }
   0xc   :  { %p177_p0 = scmp.ne.s32.totalorder %s136_s14, %s176_s15  ;;  %p182_p2 = scmp.lt.s32.totalorder %s176_s15, %s176_s15 }
   0xd   :  { %158 = vmatpush3.bf16.xpose.msra.mxu0 %v54_v8 }
   0xe   :  { %159 = vmatprep.subr.bf16.mxu0 %v200_v2  ;;  %p183_p3 = por %p182_p2, %p181_p1 }
  0x10   :  { %p184_p4 = pnand %p183_p3, %p177_p0 }
  0x15   :  { %160 = vmatpush3.bf16.xpose.msra.mxu0 %v57_v12 }
  0x16   :  { %161 = vmatprep.subr.bf16.mxu0 %v200_v2 }
  0x1d   :  { %162 = vmatpush3.bf16.xpose.msra.mxu0 %v60_v16 }
  0x1e   :  { %163 = vmatprep.subr.bf16.mxu0 %v200_v2 }
  0x25   :  { %164 = vmatpush3.bf16.xpose.msra.mxu0 %v63_v20 }
  0x26   :  { %165 = vmatprep.subr.bf16.mxu0 %v200_v2 }
  0x2d   :  { %166 = vmatpush3.bf16.xpose.msra.mxu0 %v66_v24 }
  0x34   :  { %168 = vmatmul.mubr.msk.bf16.vlgmr.msra.gmra.mrb[0].mxu0 %vm46_vm0, %v27_v27 }
 0x107   :  { %v102_v29 = vpop.f32.mrb[0].mxu0 }
 0x108   :  { %v109_v31 = vadd.f32 %v102_v29, %v23_v28  ;;  %v169_v32 = vpop.f32.mrb[1].mxu0 }
 0x109   :  { %v105_v33 = vpop.f32.mrb[2].mxu0 }
 0x10a   :  { %112 = vst.msk [vmem:[#allocation2] sm:$0xff] %vm20_vm2, %v109_v31  ;;  %v110_v34 = vadd.f32 %v105_v33, %v24_v30  ;;  %v170_v35 = vpop.f32.mrb[3].mxu0 }
 0x10c   :  { %113 = vst.msk [vmem:[#allocation2 + $0x8] sm:$0xff] %vm20_vm2, %v110_v34 }
 0x111   :  { %v117_v37 = vld [vmem:[#allocation2] sm:$0xff] }
 0x112   :  { %v126_v38 = vadd.f32 %v147_v36, %v117_v37 }
 0x113   :  { %v118_v39 = vld [vmem:[#allocation2 + $0x8] sm:$0xff] }
 0x114   :  { %v127_v40 = vadd.f32 %v147_v36, %v118_v39  ;;  %128 = vst.msk [vmem:[#allocation3] sm:$0xff] %vm20_vm2, %v126_v38 }
 0x116   :  { %129 = vst.msk [vmem:[#allocation3 + $0x8] sm:$0xff] %vm20_vm2, %v127_v40 }
 0x117   :  { %187 = shalt.err (!%p184_p4)
}
 0x118   :  { %s188_s17 = scalar_lea.hbm %s298_s3, 256 }
 0x119   :  { %p189_p5 = scmp.ne.s32.totalorder %s298_s3, %s188_s17  ;;  %p192_p6 = scmp.lt.u32.totalorder %s188_s17, %s298_s3 }
 0x11b   :  { %p194_p7 = pnand %p192_p6, %p189_p5 }
 0x11d   :  { %197 = shalt.err (!%p194_p7)
}
 0x11e   :  { %s203_s22 = smov 128   ;;  %s204_s23 = smov 8  }
 0x11f   :  { %141 = dma.vmem_to_hbm [thread:$0]  %s136_s14, 256, %s298_s3, [#allocation4], %s203_s22, %s203_s22, %s204_s23  }
 0x120   :  { %198 = dma.done.wait [#allocation4], 256  }
 0x121   :  { %199 = vsyncadd [#allocation4], 4294967040 }
 0x122   :  { %145 = vsyncpa [#allocation4], 1 }

</bundles_post_ra>
